<compile_context>
chip_gen: v7x
topology: tpu7x:2x2x1
jax: 0.10.0
libtpu: 0.0.40
codegen_flags: <defaults>
</compile_context>

<pallas_src>
import math

import numpy as np
import jax
import jax.numpy as jnp
from jax import lax
from jax.experimental import pallas as pl
from jax.experimental.pallas import tpu as pltpu

# Deterministic SNNParameters (module defaults' semantics: tau_mem is a scalar decay
# constant; vth is stored but unused on the LI snn_process path).
TAU_MEM = 0.5
VTH_INIT = 1.0

_TARGET_BLOCK_BYTES = 4 << 20      # ~4 MiB of f32 output per row block
_VMEM_BUDGET_BYTES = 40 << 20      # double-buffered in+out+decay kept under this
_VMEM_LIMIT_BYTES = 48 << 20       # < 64 MiB physical VMEM on v7x, << 128 MiB on v5e/v6e


def _li_matmul_kernel(x_ref, d_ref, o_ref):
    """o = x @ D.  x_ref: (bm, W) input tile, d_ref: (W, W) decay matrix, o_ref: (bm, W) f32."""
    o_ref[...] = jnp.dot(
        x_ref[...].astype(jnp.float32),
        d_ref[...],
        precision=lax.Precision.HIGHEST,          # keep ~f32 accuracy on the MXU
        preferred_element_type=jnp.float32,
    )


def _decay_matrix(t_steps, tau):
    """A[s, t] = tau**(t-s) for s <= t else 0, so (x @ A)[..., t] is the LI output at step t."""
    s = np.arange(t_steps)[:, None]
    t = np.arange(t_steps)[None, :]
    e = np.maximum(t - s, 0)
    return np.where(s <= t, np.float64(tau) ** e, 0.0).astype(np.float32)


def _choose_bm(M, W, in_itemsize):
    """Row-block size: multiple of 8, ~4 MiB f32-output blocks, VMEM-bounded, >=2 grid blocks."""
    if M <= 8:
        return M                                   # block dim == full array dim: legal
    d_bytes = 2 * W * W * 4                        # decay matrix (double-buffer bound)
    per_row = 2 * W * (max(in_itemsize, 1) + 4)    # double-buffered input + f32 output
    bm = _TARGET_BLOCK_BYTES // (W * 4)
    bm = min(bm, max(_VMEM_BUDGET_BYTES - d_bytes, per_row * 8) // per_row)
    bm = min(max(bm, 8), M)
    bm = max(8, (bm // 8) * 8)
    if bm >= M:
        # Keep >= 2 blocks in flight so both v7x TensorCores get work.
        bm = max(8, ((M + 1) // 2 // 8) * 8)
    return bm


def li_forward(x):
    """LI forward pass (snn_process=True). x: [..., T]. Returns float32, same shape."""
    orig_shape = x.shape
    T = orig_shape[-1]
    N = math.prod(orig_shape[:-1])

    # Pad the time axis up to Tp: next power of two (divides 128) for T <= 128, else the
    # next multiple of 128.  For the common SNN case (T a power of two <= 128) it's a no-op.
    if T <= 128:
        Tp = 1 << max(0, (T - 1).bit_length())
    else:
        Tp = ((T + 127) // 128) * 128

    x2 = x.reshape(N, T)
    if Tp != T:
        x2 = jnp.pad(x2, ((0, 0), (0, Tp - T)))    # see TODO(synk) above

    if Tp <= 128:
        # Transpose-free lane-dense layout: each 128-wide row = 128/Tp neurons x Tp steps.
        W = 128
        k = 128 // Tp
        D = np.kron(np.eye(k, dtype=np.float32), _decay_matrix(Tp, TAU_MEM))
        flat = x2.reshape(-1)
        total = N * Tp
        pad_flat = (-total) % 128
        if pad_flat:
            flat = jnp.pad(flat, (0, pad_flat))    # rare: N*Tp not a multiple of 128
        M = (total + pad_flat) // 128
        xm = flat.reshape(M, W)
    else:
        # T > 128: plain [N, Tp] @ [Tp, Tp]; still transpose-free.
        W = Tp
        D = _decay_matrix(Tp, TAU_MEM)
        M = N
        total = None
        pad_flat = 0
        xm = x2

    bm = _choose_bm(M, W, jnp.dtype(x.dtype).itemsize)
    grid = (pl.cdiv(M, bm),)

    out = pl.pallas_call(
        _li_matmul_kernel,
        out_shape=jax.ShapeDtypeStruct((M, W), jnp.float32),
        grid_spec=pltpu.PrefetchScalarGridSpec(
            num_scalar_prefetch=0,
            grid=grid,
            in_specs=[
                pl.BlockSpec((bm, W), lambda i: (i, 0)),
                pl.BlockSpec((W, W), lambda i: (0, 0)),   # constant block: DMA'd once
            ],
            out_specs=pl.BlockSpec((bm, W), lambda i: (i, 0)),
        ),
        compiler_params=pltpu.CompilerParams(
            dimension_semantics=("parallel",),
            vmem_limit_bytes=_VMEM_LIMIT_BYTES,
        ),
    )(xm, jnp.asarray(D))

    if Tp <= 128:
        u = out.reshape(-1)
        if pad_flat:
            u = u[:total]
        u = u.reshape(N, Tp)
    else:
        u = out
    if Tp != T:
        u = u[:, :T]
    return u.reshape(orig_shape)


def li_reference(x):
    """Pure-JAX reference mirroring the PyTorch loop."""
    T = x.shape[-1]
    u = jnp.zeros(x.shape[:-1], dtype=jnp.float32)
    us = []
    for t in range(T):
        u = TAU_MEM * u + x[..., t].astype(jnp.float32)
        us.append(u)
    return jnp.stack(us, axis=-1)


if __name__ == "__main__":
    key = jax.random.PRNGKey(0)
    li = jax.jit(li_forward)

    # Primary check: NCHW + T timesteps (T divides 128 -> fully transpose/pad-free path).
    B, C, H, Wd, T = 2, 4, 16, 16, 8
    x = jax.random.normal(key, (B, C, H, Wd, T), dtype=jnp.float32)
    y = jax.block_until_ready(li(x))
    assert y.shape == x.shape and y.dtype == jnp.float32
    assert jnp.allclose(y, li_reference(x), atol=2e-5, rtol=1e-5), "mismatch vs reference (T=8)"

    # Secondary check: exercises the padded-time / padded-flat path (T does not divide 128).
    x2 = jax.random.normal(jax.random.PRNGKey(0), (2, 3, 5, 7, 10), dtype=jnp.float32)
    y2 = jax.block_until_ready(jax.jit(li_forward)(x2))
    assert y2.shape == x2.shape and y2.dtype == jnp.float32
    assert jnp.allclose(y2, li_reference(x2), atol=2e-5, rtol=1e-5), "mismatch vs reference (T=10)"

    print("KERNEL_OK")
</pallas_src>

<mosaic_0001>
module attributes {stable_mosaic.version = 11 : i64} {
  func.func @_li_matmul_kernel(%arg0: i32, %arg1: memref<64x128xf32, #tpu.memory_space<vmem>>, %arg2: memref<128x128xf32, #tpu.memory_space<vmem>>, %arg3: memref<64x128xf32, #tpu.memory_space<vmem>>) attributes {dimension_semantics = [#tpu.dimension_semantics<parallel>], iteration_bounds = array<i64: 2>, scalar_prefetch = 0 : i64, scratch_operands = 0 : i64, tpu.core_type = #tpu.core_type<tc>, window_params = [{transform_indices = @transform_0, window_bounds = array<i64: 64, 128>}, {pipeline_mode = #tpu.pipeline_mode<synchronous>, transform_indices = @transform_1, window_bounds = array<i64: 128, 128>}, {transform_indices = @transform_2, window_bounds = array<i64: 64, 128>}]} {
    %c0 = arith.constant 0 : index
    %c0_0 = arith.constant 0 : index
    %0 = vector.load %arg1[%c0, %c0_0] : memref<64x128xf32, #tpu.memory_space<vmem>>, vector<64x128xf32>
    %c0_1 = arith.constant 0 : index
    %c0_2 = arith.constant 0 : index
    %1 = vector.load %arg2[%c0_1, %c0_2] : memref<128x128xf32, #tpu.memory_space<vmem>>, vector<128x128xf32>
    %cst = arith.constant dense<0.000000e+00> : vector<64x128xf32>
    %2 = tpu.matmul %0, %1, %cst {dimension_numbers = #tpu.dot_dimension_numbers<[1], [0], [0], [1], [0, 0, 1, 1], [], []>, precision = #tpu.contract_precision<fp32>} : vector<64x128xf32>, vector<128x128xf32>, vector<64x128xf32> -> vector<64x128xf32>
    %c0_3 = arith.constant 0 : index
    %c0_4 = arith.constant 0 : index
    %3 = vector.load %arg3[%c0_3, %c0_4] : memref<64x128xf32, #tpu.memory_space<vmem>>, vector<64x128xf32>
    tpu.vector_store %arg3[%c0_3, %c0_4], %2 {strides = array<i32>} : memref<64x128xf32, #tpu.memory_space<vmem>>, vector<64x128xf32>,
    return
  }
  func.func @transform_0(%arg0: i32) -> (i32, i32) {
    %c0_i32 = arith.constant 0 : i32
    %c0_i32_0 = arith.constant 0 : i32
    return %arg0, %c0_i32 : i32, i32
  }
  func.func @transform_1(%arg0: i32) -> (i32, i32) {
    %c0_i32 = arith.constant 0 : i32
    %c0_i32_0 = arith.constant 0 : i32
    %c0_i32_1 = arith.constant 0 : i32
    return %c0_i32, %c0_i32_0 : i32, i32
  }
  func.func @transform_2(%arg0: i32) -> (i32, i32) {
    %c0_i32 = arith.constant 0 : i32
    %c0_i32_0 = arith.constant 0 : i32
    return %arg0, %c0_i32 : i32, i32
  }
}

</mosaic_0001>

<bundles_post_ra>
// kernel: li_forward.1
= control target key start
LH: loop header
LB: loop body
LE: loop exit
PB: predicated region body
PF: predicated region fallthrough
CT: control target
= control target key end

     0   :  { %s1859_s9 = smov 0   ;;  %s2295_s0 = inlined_call_operand.vmem [shape: f32[128,128], index: 0, kind: input, shape index: {}]   ;;  %s2296_s1 = inlined_call_operand.vmem [shape: f32[128,128], index: 1, kind: input, shape index: {}]   ;;  %s2297_s2 = inlined_call_operand.vmem [shape: f32[128,128], index: 2, kind: output, shape index: {}]  }
   0x1 LB: > { %s1177_s10 = sadd.s32 4294967295, %s1842_s9   ;;  %p1181_p0 = scmp.ge.s32.totalorder %s1842_s9, 1  ;;  %s1842_s9 = sphi %s1859_s9, %s12_s9  }
   0x2   : > { %p113_p1 = scmp.lt.s32.totalorder %s1842_s9, 3 }
   0x4   : > { %p114_p2 = pnand %p1181_p0, %p113_p1 }
   0x6   : > { %117 = sbr.rel (%p114_p2) target bundleno = 342 (0x156), region = 28 }
   0xd   : > { %v155_v0 = vld [vmem:[%s2296_s1] sm:$0xff]  ;;  %v156_v1 = vld [vmem:[%s2296_s1 + $0x8] sm:$0xff]  ;;  %v157_v2 = vld [vmem:[%s2296_s1 + $0x10] sm:$0xff]  ;;  %s1182_s17 = sshll.u32 %s1177_s10, 3 }
   0xe   : > { %v172_v3 = vand.u32 4294901760, %v155_v0  ;;  %v175_v4 = vand.u32 4294901760, %v156_v1  ;;  %v1879_v5 = vld [vmem:[%s2296_s1 + $0x18] sm:$0xff]  ;;  %v178_v6 = vand.u32 4294901760, %v157_v2  ;;  %v1884_v7 = vld [vmem:[%s2296_s1 + $0x20] sm:$0xff]  ;;  %v1889_v8 = vld [vmem:[%s2296_s1 + $0x28] sm:$0xff] }
   0xf   : > { %v181_v9 = vand.u32 4294901760, %v1879_v5  ;;  %v184_v11 = vand.u32 4294901760, %v1884_v7  ;;  %v187_v12 = vand.u32 4294901760, %v1889_v8  ;;  %v1901_v14 = vld [vmem:[%s2296_s1 + $0x30] sm:$0xff]  ;;  %v1906_v15 = vld [vmem:[%s2296_s1 + $0x38] sm:$0xff]  ;;  %p136_p3 = scmp.lt.s32.totalorder %s1182_s17, 15 }
  0x10   : > { %v1892_v10 = vpack.c.bf16 %v175_v4, %v172_v3  ;;  %v190_v17 = vand.u32 4294901760, %v1901_v14  ;;  %v193_v18 = vand.u32 4294901760, %v1906_v15  ;;  %v1927_v19 = vld [vmem:[%s2296_s1 + $0x40] sm:$0xff]  ;;  %v1932_v20 = vld [vmem:[%s2296_s1 + $0x48] sm:$0xff]  ;;  %v1958_v25 = vld [vmem:[%s2296_s1 + $0x50] sm:$0xff]  ;;  %v1970_v29 = vsub.f32 %v155_v0, %v172_v3 }
  0x11   : > { %v1896_v13 = vpack.c.bf16 %v181_v9, %v178_v6  ;;  %s2350_s17 = smov (!%p136_p3, %s1182_s17), 15  ;;  %v1920_v16 = vpack.c.bf16 %v187_v12, %v184_v11  ;;  %v196_v23 = vand.u32 4294901760, %v1927_v19  ;;  %v199_v24 = vand.u32 4294901760, %v1932_v20  ;;  %v1965_v27 = vld [vmem:[%s2296_s1 + $0x58] sm:$0xff]  ;;  %v1990_v35 = vld [vmem:[%s2296_s1 + $0x60] sm:$0xff]  ;;  %v1995_v36 = vld [vmem:[%s2296_s1 + $0x68] sm:$0xff] }
  0x12   : > { %1597 = vmatprep.subr.bf16.mxu1 %v1892_v10  ;;  %1693 = vmatprep.subr.bf16.mxu0 %v1892_v10  ;;  %s1183_s4 = sshll.u32 %s2350_s17, 3  ;;  %v1951_v22 = vpack.c.bf16 %v193_v18, %v190_v17  ;;  %v1972_v30 = vsub.f32 %v156_v1, %v175_v4  ;;  %v202_v32 = vand.u32 4294901760, %v1958_v25  ;;  %v2303_v34 = vand.u32 4294901760, %v1965_v27  ;;  %v2005_v40 = vld [vmem:[%s2296_s1 + $0x70] sm:$0xff]  ;;  %v2010_v41 = vld [vmem:[%s2296_s1 + $0x78] sm:$0xff] }
  0x13   : > { %1599 = vmatpush3.bf16.msra.mxu1 %v1892_v10  ;;  %1695 = vmatpush3.bf16.msra.mxu0 %v1892_v10  ;;  %s1940_s7 = scalar_lea.vmem %s2295_s0, %s1183_s4  ;;  %v1984_v33 = vpack.c.bf16 %v199_v24, %v196_v23  ;;  %v1998_v38 = vsub.f32 %v157_v2, %v178_v6  ;;  %v335_v43 = vand.u32 4294901760, %v1970_v29  ;;  %v2301_v46 = vand.u32 4294901760, %v1990_v35  ;;  %s2282_s24 = scalar_lea.vmem %s2297_s2, %s1183_s4 }
  0x14   : > { %1601 = vmatprep.subr.bf16.mxu1 %v1896_v13  ;;  %1697 = vmatprep.subr.bf16.mxu0 %v1896_v13  ;;  %v147_v21 = vld [vmem:[%s1940_s7] sm:$0xff]  ;;  %2322 = vst [vmem:[#allocation2_spill] sm:$0xff] %v1951_v22  ;;  %v148_v31 = vld [vmem:[%s1940_s7 + $0x8] sm:$0xff]  ;;  %v342_v44 = vand.u32 4294901760, %v1972_v30  ;;  %v149_v45 = vld [vmem:[%s1940_s7 + $0x10] sm:$0xff]  ;;  %v2300_v47 = vand.u32 4294901760, %v1995_v36  ;;  %v2021_v48 = vsub.f32 %v1879_v5, %v181_v9  ;;  %v2030_v50 = vpack.c.bf16 %v2303_v34, %v202_v32 }
  0x15   : > { %v1960_v26 = vand.u32 4294901760, %v147_v21  ;;  %2324 = vst [vmem:[#allocation4_spill] sm:$0xff] %v1984_v33  ;;  %v2000_v39 = vand.u32 4294901760, %v148_v31  ;;  %v150_v49 = vld [vmem:[%s1940_s7 + $0x18] sm:$0xff]  ;;  %v349_v52 = vand.u32 4294901760, %v1998_v38  ;;  %v2299_v53 = vand.u32 4294901760, %v2005_v40 }
  0x16   : > { %2325 = vst [vmem:[#allocation5_spill] sm:$0xff] %v2030_v50  ;;  %v2298_v54 = vand.u32 4294901760, %v2010_v41  ;;  %v2038_v56 = vand.u32 4294901760, %v149_v45  ;;  %v336_v57 = vsub.f32 %v1970_v29, %v335_v43  ;;  %v343_v58 = vsub.f32 %v1972_v30, %v342_v44  ;;  %v151_v60 = vld [vmem:[%s1940_s7 + $0x20] sm:$0xff] }
  0x17   : > { %1603 = vmatpush3.bf16.msra.mxu1 %v1896_v13  ;;  %1699 = vmatpush3.bf16.msra.mxu0 %v1896_v13  ;;  %v1968_v28 = vsub.f32 %v147_v21, %v1960_v26  ;;  %v2036_v55 = vsub.f32 %v148_v31, %v2000_v39  ;;  %v2042_v59 = vand.u32 4294901760, %v150_v49  ;;  %v2051_v61 = vpack.c.bf16 %v2300_v47, %v2301_v46  ;;  %v153_v31 = vld [vmem:[%s1940_s7 + $0x30] sm:$0xff] }
  0x18   : > { %1605 = vmatprep.subr.bf16.mxu1 %v1920_v16  ;;  %1701 = vmatprep.subr.bf16.mxu0 %v1920_v16  ;;  %v356_v62 = vand.u32 4294901760, %v2021_v48  ;;  %v2057_v63 = vsub.f32 %v1884_v7, %v184_v11  ;;  %v350_v0 = vsub.f32 %v1998_v38, %v349_v52  ;;  %v2065_v1 = vsub.f32 %v1889_v8, %v187_v12  ;;  %v152_v12 = vld [vmem:[%s1940_s7 + $0x28] sm:$0xff] }
  0x19   : > { %2323 = vst [vmem:[#allocation3_spill] sm:$0xff] %v1968_v28  ;;  %v254_v37 = vand.u32 4294901760, %v1968_v28  ;;  %2326 = vst [vmem:[#allocation6_spill] sm:$0xff] %v2051_v61  ;;  %v2070_v2 = vsub.f32 %v1901_v14, %v190_v17  ;;  %v2076_v3 = vpack.c.bf16 %v2298_v54, %v2299_v53  ;;  %v2302_v4 = vand.u32 4294901760, %v2036_v55 }
  0x1a   : > { %v2080_v5 = vsub.f32 %v149_v45, %v2038_v56  ;;  %v2082_v6 = vand.u32 4294901760, %v151_v60  ;;  %v337_v7 = vand.u32 4294901760, %v336_v57  ;;  %v344_v8 = vand.u32 4294901760, %v343_v58 }
  0x1b   : > { %1607 = vmatpush3.bf16.msra.mxu1 %v1920_v16  ;;  %1703 = vmatpush3.bf16.msra.mxu0 %v1920_v16  ;;  %v255_v42 = vsub.f32 %v1968_v28, %v254_v37  ;;  %2327 = vst [vmem:[#allocation7_spill] sm:$0xff] %v2076_v3  ;;  %v2087_v9 = vsub.f32 %v1906_v15, %v193_v18  ;;  %v351_v15 = vand.u32 4294901760, %v350_v0  ;;  %v363_v18 = vand.u32 4294901760, %v2057_v63 }
  0x1c   : > { %1609 = vmatprep.subr.bf16.mxu1 %v1951_v22  ;;  %1705 = vmatprep.subr.bf16.mxu0 %v1951_v22  ;;  %2328 = vst [vmem:[#allocation8_spill] sm:$0xff] %v2080_v5  ;;  %v2090_v11 = vsub.f32 %v150_v49, %v2042_v59  ;;  %v1724_v14 = vpack.c.bf16 %v342_v44, %v335_v43  ;;  %v274_v44 = vand.u32 4294901760, %v2080_v5  ;;  %v2111_v49 = vand.u32 4294901760, %v152_v12 }
  0x1d   : > { %1496 = vmatprep.mubr.f32.mxu0 %v254_v37  ;;  %v256_v51 = vand.u32 4294901760, %v255_v42  ;;  %v357_v17 = vsub.f32 %v2021_v48, %v356_v62  ;;  %v2096_v21 = vpack.c.bf16 %v356_v62, %v349_v52  ;;  %v370_v37 = vand.u32 4294901760, %v2065_v1 }
  0x1e   : > { %2329 = vst [vmem:[#allocation9_spill] sm:$0xff] %v2090_v11  ;;  %v2304_v42 = vand.u32 4294901760, %v2070_v2  ;;  %v265_v43 = vsub.f32 %v2036_v55, %v2302_v4  ;;  %v2109_v45 = vsub.f32 %v151_v60, %v2082_v6  ;;  %v1628_v52 = vpack.c.bf16 %v344_v8, %v337_v7 }
  0x1f   : > { %1611 = vmatpush3.bf16.msra.mxu1 %v1951_v22  ;;  %1707 = vmatpush3.bf16.msra.mxu0 %v1951_v22  ;;  %v384_v57 = vand.u32 4294901760, %v2087_v9  ;;  %v284_v58 = vand.u32 4294901760, %v2090_v11  ;;  %v2116_v62 = vand.u32 4294901760, %v153_v31  ;;  %v358_v0 = vand.u32 4294901760, %v357_v17 }
  0x20   : > { %1613 = vmatprep.subr.bf16.mxu1 %v1984_v33  ;;  %1709 = vmatprep.subr.bf16.mxu0 %v1984_v33  ;;  %v2123_v60 = vsub.f32 %v1927_v19, %v196_v23  ;;  %v2128_v7 = vsub.f32 %v1932_v20, %v199_v24  ;;  %v2131_v8 = vsub.f32 %v152_v12, %v2111_v49  ;;  %v266_v53 = vand.u32 4294901760, %v265_v43 }
  0x21   : > { %1364 = vmatprep.mubr.f32.mxu1 %v256_v51  ;;  %v154_v51 = vld [vmem:[%s1940_s7 + $0x38] sm:$0xff]  ;;  %2330 = vst [vmem:[#allocation10_spill] sm:$0xff] %v2116_v62  ;;  %v364_v54 = vsub.f32 %v2057_v63, %v363_v18  ;;  %v371_v17 = vsub.f32 %v2065_v1, %v370_v37  ;;  %v378_v19 = vsub.f32 %v2070_v2, %v2304_v42  ;;  %v294_v24 = vand.u32 4294901760, %v2109_v45 }
  0x22   : > { %v2140_v23 = vand.u32 4294901760, %v154_v51  ;;  %v275_v20 = vsub.f32 %v2080_v5, %v274_v44  ;;  %v2145_v12 = vsub.f32 %v153_v31, %v2116_v62  ;;  %v385_v47 = vsub.f32 %v2087_v9, %v384_v57 }
  0x23   : > { %1615 = vmatpush3.bf16.msra.mxu1 %v1984_v33  ;;  %1711 = vmatpush3.bf16.msra.mxu0 %v1984_v33  ;;  %v285_v46 = vsub.f32 %v2090_v11, %v284_v58  ;;  %v304_v4 = vand.u32 4294901760, %v2131_v8  ;;  %v391_v43 = vand.u32 4294901760, %v2123_v60  ;;  %v398_v42 = vand.u32 4294901760, %v2128_v7 }
  0x24   : > { %1617 = vmatprep.subr.bf16.mxu1 %v2030_v50  ;;  %1713 = vmatprep.subr.bf16.mxu0 %v2030_v50  ;;  %2331 = vst [vmem:[#allocation11_spill] sm:$0xff] %v2140_v23  ;;  %v2151_v34 = vsub.f32 %v154_v51, %v2140_v23  ;;  %v2160_v31 = vsub.f32 %v1958_v25, %v202_v32  ;;  %v2332_v11 = vand.u32 4294901760, %v1965_v27  ;;  %v379_v28 = vand.u32 4294901760, %v378_v19 }
  0x25   : > { %v1632_v51 = vpack.c.bf16 %v358_v0, %v351_v15  ;;  %v276_v33 = vand.u32 4294901760, %v275_v20  ;;  %v295_v23 = vsub.f32 %v2109_v45, %v294_v24  ;;  %v314_v62 = vand.u32 4294901760, %v2145_v12 }
  0x26   : > { %v2165_v5 = vsub.f32 %v1965_v27, %v2332_v11  ;;  %v2333_v25 = vand.u32 4294901760, %v2036_v55  ;;  %v386_v32 = vand.u32 4294901760, %v385_v47  ;;  %v286_v22 = vand.u32 4294901760, %v285_v46 }
  0x27   : > { %1619 = vmatpush3.bf16.msra.mxu1 %v2030_v50  ;;  %1715 = vmatpush3.bf16.msra.mxu0 %v2030_v50  ;;  %v372_v50 = vand.u32 4294901760, %v371_v17  ;;  %v305_v27 = vsub.f32 %v2131_v8, %v304_v4  ;;  %v324_v11 = vand.u32 4294901760, %v2151_v34  ;;  %v399_v15 = vsub.f32 %v2128_v7, %v398_v42 }
  0x28   : > { %1621 = vmatprep.subr.bf16.mxu1 %v2051_v61  ;;  %1717 = vmatprep.subr.bf16.mxu0 %v2051_v61  ;;  %v2334_v46 = vand.u32 4294901760, %v1990_v35  ;;  %v296_v0 = vand.u32 4294901760, %v295_v23  ;;  %v315_v17 = vsub.f32 %v2145_v12, %v314_v62  ;;  %v1640_v19 = vpack.c.bf16 %v386_v32, %v379_v28 }
  0x29   : > { %v2336_v20 = vand.u32 4294901760, %v2070_v2  ;;  %v2338_v23 = vand.u32 4294901760, %v2010_v41 }
  0x2a   : > { %v2181_v47 = vsub.f32 %v1990_v35, %v2334_v46  ;;  %v325_v35 = vsub.f32 %v2151_v34, %v324_v11 }
  0x2b   : > { %1623 = vmatpush3.bf16.msra.mxu1 %v2051_v61  ;;  %1719 = vmatpush3.bf16.msra.mxu0 %v2051_v61  ;;  %v365_v61 = vand.u32 4294901760, %v364_v54  ;;  %v392_v54 = vsub.f32 %v2123_v60, %v391_v43 }
  0x2c   : > { %1625 = vmatprep.subr.bf16.mxu1 %v2076_v3  ;;  %1721 = vmatprep.subr.bf16.mxu0 %v2076_v3  ;;  %v419_v28 = vand.u32 4294901760, %v2181_v47  ;;  %v326_v32 = vand.u32 4294901760, %v325_v35 }
  0x2f   : > { %1627 = vmatpush3.bf16.msra.mxu1 %v2076_v3  ;;  %1723 = vmatpush3.bf16.msra.mxu0 %v2076_v3  ;;  %v1732_v3 = vpack.c.bf16 %v370_v37, %v363_v18  ;;  %v405_v18 = vand.u32 4294901760, %v2160_v31  ;;  %v412_v37 = vand.u32 4294901760, %v2165_v5 }
  0x30   : > { %1629 = vmatprep.subr.bf16.mxu1 %v1628_v52  ;;  %1725 = vmatprep.subr.bf16.mxu0 %v1724_v14 }
  0x32   : > { %1365 = vmatmul.mubr.f32.vlgmr.msra.gmra.mrb[0].mxu1 %v266_v53  ;;  %1497 = vmatmul.mubr.f32.vlgmr.msra.gmra.mrb[0].mxu0 %v2333_v25  ;;  %v1636_v53 = vpack.c.bf16 %v372_v50, %v365_v61  ;;  %v1736_v25 = vpack.c.bf16 %v384_v57, %v2336_v20  ;;  %v306_v50 = vand.u32 4294901760, %v305_v27  ;;  %v393_v61 = vand.u32 4294901760, %v392_v54 }
  0x33   : > { %1631 = vmatpush3.bf16.msra.mxu1 %v1628_v52  ;;  %1727 = vmatpush3.bf16.msra.mxu0 %v1724_v14  ;;  %v2335_v52 = vand.u32 4294901760, %v1995_v36  ;;  %v1740_v54 = vpack.c.bf16 %v398_v42, %v391_v43  ;;  %v1660_v20 = vpack.c.bf16 %v1972_v30, %v1970_v29  ;;  %v1668_v29 = vpack.c.bf16 %v2065_v1, %v2057_v63  ;;  %v2339_v30 = vld [vmem:[#allocation2_spill] sm:$0xff]  ;;  %v2342_v63 = vld [vmem:[#allocation4_spill] sm:$0xff]  ;;  %v2343_v1 = vld [vmem:[#allocation3_spill] sm:$0xff] }
  0x34   : > { %1633 = vmatprep.subr.bf16.mxu1 %v1632_v51  ;;  %1729 = vmatprep.subr.bf16.mxu0 %v2096_v21 }
  0x35   : > { %v2186_v14 = vsub.f32 %v1995_v36, %v2335_v52  ;;  %1367 = vmatprep.mubr.f32.mxu1 %v276_v33  ;;  %1499 = vmatprep.mubr.f32.mxu0 %v274_v44  ;;  %v400_v36 = vand.u32 4294901760, %v399_v15  ;;  %v406_v33 = vsub.f32 %v2160_v31, %v405_v18  ;;  %v413_v44 = vsub.f32 %v2165_v5, %v412_v37 }
  0x36   : > { %1368 = vmatmul.mubr.f32.gmra.mrb[2].mxu1 %v286_v22  ;;  %1500 = vmatmul.mubr.f32.gmra.mrb[2].mxu0 %v284_v58  ;;  %v2337_v22 = vand.u32 4294901760, %v2005_v40 }
  0x37   : > { %1635 = vmatpush3.bf16.msra.mxu1 %v1632_v51  ;;  %1731 = vmatpush3.bf16.msra.mxu0 %v2096_v21  ;;  %v426_v57 = vand.u32 4294901760, %v2186_v14  ;;  %v2205_v21 = vsub.f32 %v2010_v41, %v2338_v23  ;;  %v316_v51 = vand.u32 4294901760, %v315_v17  ;;  %v1644_v27 = vpack.c.bf16 %v400_v36, %v393_v61 }
  0x38   : > { %1637 = vmatprep.subr.bf16.mxu1 %v1636_v53  ;;  %1733 = vmatprep.subr.bf16.mxu0 %v1732_v3  ;;  %v2200_v58 = vsub.f32 %v2005_v40, %v2337_v22  ;;  %v407_v15 = vand.u32 4294901760, %v406_v33  ;;  %v414_v46 = vand.u32 4294901760, %v413_v44  ;;  %v420_v40 = vsub.f32 %v2181_v47, %v419_v28 }
  0x39   : > { %1370 = vmatprep.mubr.f32.mxu1 %v296_v0  ;;  %1502 = vmatprep.mubr.f32.mxu0 %v294_v24  ;;  %v427_v52 = vsub.f32 %v2186_v14, %v426_v57  ;;  %v440_v24 = vand.u32 4294901760, %v2205_v21 }
  0x3a   : > { %1371 = vmatmul.mubr.f32.gmra.mrb[4].mxu1 %v306_v50  ;;  %1503 = vmatmul.mubr.f32.gmra.mrb[4].mxu0 %v304_v4  ;;  %v433_v41 = vand.u32 4294901760, %v2200_v58  ;;  %v1744_v4 = vpack.c.bf16 %v412_v37, %v405_v18  ;;  %v421_v42 = vand.u32 4294901760, %v420_v40 }
  0x3b   : > { %1639 = vmatpush3.bf16.msra.mxu1 %v1636_v53  ;;  %1735 = vmatpush3.bf16.msra.mxu0 %v1732_v3  ;;  %v1648_v3 = vpack.c.bf16 %v414_v46, %v407_v15  ;;  %v428_v43 = vand.u32 4294901760, %v427_v52  ;;  %v441_v0 = vsub.f32 %v2205_v21, %v440_v24 }
  0x3c   : > { %1641 = vmatprep.subr.bf16.mxu1 %v1640_v19  ;;  %1737 = vmatprep.subr.bf16.mxu0 %v1736_v25  ;;  %v434_v53 = vsub.f32 %v2200_v58, %v433_v41 }
  0x3d   : > { %1373 = vmatprep.mubr.f32.mxu1 %v316_v51  ;;  %1505 = vmatprep.mubr.f32.mxu0 %v314_v62  ;;  %v1652_v62 = vpack.c.bf16 %v428_v43, %v421_v42  ;;  %v442_v18 = vand.u32 4294901760, %v441_v0 }
  0x3e   : > { %1374 = vmatmul.mubr.f32.gmra.mrb[6].mxu1 %v326_v32  ;;  %1506 = vmatmul.mubr.f32.gmra.mrb[6].mxu0 %v324_v11  ;;  %v1748_v11 = vpack.c.bf16 %v426_v57, %v419_v28  ;;  %v435_v17 = vand.u32 4294901760, %v434_v53 }
  0x3f   : > { %1643 = vmatpush3.bf16.msra.mxu1 %v1640_v19  ;;  %1739 = vmatpush3.bf16.msra.mxu0 %v1736_v25  ;;  %v1752_v19 = vpack.c.bf16 %v440_v24, %v433_v41  ;;  %v1664_v25 = vpack.c.bf16 %v2021_v48, %v1998_v38  ;;  %v2340_v38 = vld [vmem:[#allocation10_spill] sm:$0xff]  ;;  %v2341_v48 = vld [vmem:[#allocation11_spill] sm:$0xff] }
  0x40   : > { %1645 = vmatprep.subr.bf16.mxu1 %v1644_v27  ;;  %1741 = vmatprep.subr.bf16.mxu0 %v1740_v54  ;;  %v1656_v37 = vpack.c.bf16 %v442_v18, %v435_v17 }
  0x41   : > { %1408 = vmatprep.mubr.f32.mxu1 %v1960_v26  ;;  %1540 = vmatprep.mubr.f32.mxu0 %v1960_v26 }
  0x43   : > { %1647 = vmatpush3.bf16.msra.mxu1 %v1644_v27  ;;  %1743 = vmatpush3.bf16.msra.mxu0 %v1740_v54 }
  0x44   : > { %1649 = vmatprep.subr.bf16.mxu1 %v1648_v3  ;;  %1745 = vmatprep.subr.bf16.mxu0 %v1744_v4 }
  0x47   : > { %1651 = vmatpush3.bf16.msra.mxu1 %v1648_v3  ;;  %1747 = vmatpush3.bf16.msra.mxu0 %v1744_v4 }
  0x48   : > { %1653 = vmatprep.subr.bf16.mxu1 %v1652_v62  ;;  %1749 = vmatprep.subr.bf16.mxu0 %v1748_v11 }
  0x4b   : > { %1655 = vmatpush3.bf16.msra.mxu1 %v1652_v62  ;;  %1751 = vmatpush3.bf16.msra.mxu0 %v1748_v11 }
  0x4c   : > { %1657 = vmatprep.subr.bf16.mxu1 %v1656_v37  ;;  %1753 = vmatprep.subr.bf16.mxu0 %v1752_v19 }
  0x4f   : > { %1659 = vmatpush3.bf16.msra.mxu1 %v1656_v37  ;;  %1755 = vmatpush3.bf16.msra.mxu0 %v1752_v19 }
  0x50   : > { %1661 = vmatprep.subr.bf16.mxu1 %v1660_v20  ;;  %1757 = vmatprep.subr.bf16.mxu0 %v1892_v10 }
  0x52   : > { %1409 = vmatmul.mubr.f32.vlgmr.msra.gmra.mrb[0].mxu1 %v2000_v39  ;;  %1541 = vmatmul.mubr.f32.vlgmr.msra.gmra.mrb[0].mxu0 %v2000_v39 }
  0x53   : > { %1663 = vmatpush3.bf16.msra.mxu1 %v1660_v20  ;;  %1759 = vmatpush3.bf16.msra.mxu0 %v1892_v10  ;;  %v1672_v10 = vpack.c.bf16 %v2087_v9, %v2070_v2  ;;  %v2344_v2 = vld [vmem:[#allocation5_spill] sm:$0xff]  ;;  %v1684_v9 = vpack.c.bf16 %v2186_v14, %v2181_v47 }
  0x54   : > { %1665 = vmatprep.subr.bf16.mxu1 %v1664_v25  ;;  %1761 = vmatprep.subr.bf16.mxu0 %v1896_v13 }
  0x55   : > { %1411 = vmatprep.mubr.f32.mxu1 %v2038_v56  ;;  %1543 = vmatprep.mubr.f32.mxu0 %v2038_v56 }
  0x56   : > { %1412 = vmatmul.mubr.f32.gmra.mrb[2].mxu1 %v2042_v59  ;;  %1544 = vmatmul.mubr.f32.gmra.mrb[2].mxu0 %v2042_v59 }
  0x57   : > { %1667 = vmatpush3.bf16.msra.mxu1 %v1664_v25  ;;  %1763 = vmatpush3.bf16.msra.mxu0 %v1896_v13  ;;  %v1676_v13 = vpack.c.bf16 %v2128_v7, %v2123_v60  ;;  %v2345_v60 = vld [vmem:[#allocation6_spill] sm:$0xff]  ;;  %v2347_v7 = vld [vmem:[#allocation8_spill] sm:$0xff] }
  0x58   : > { %1669 = vmatprep.subr.bf16.mxu1 %v1668_v29  ;;  %1765 = vmatprep.subr.bf16.mxu0 %v1920_v16 }
  0x59   : > { %1414 = vmatprep.mubr.f32.mxu1 %v2082_v6  ;;  %1546 = vmatprep.mubr.f32.mxu0 %v2082_v6 }
  0x5a   : > { %1415 = vmatmul.mubr.f32.gmra.mrb[4].mxu1 %v2111_v49  ;;  %1547 = vmatmul.mubr.f32.gmra.mrb[4].mxu0 %v2111_v49 }
  0x5b   : > { %1671 = vmatpush3.bf16.msra.mxu1 %v1668_v29  ;;  %1767 = vmatpush3.bf16.msra.mxu0 %v1920_v16  ;;  %v1680_v16 = vpack.c.bf16 %v2165_v5, %v2160_v31  ;;  %v1688_v5 = vpack.c.bf16 %v2205_v21, %v2200_v58  ;;  %v2348_v31 = vld [vmem:[#allocation9_spill] sm:$0xff] }
  0x5c   : > { %1673 = vmatprep.subr.bf16.mxu1 %v1672_v10  ;;  %1769 = vmatprep.subr.bf16.mxu0 %v2339_v30 }
  0x5d   : > { %1417 = vmatprep.mubr.f32.mxu1 %v2340_v38  ;;  %1549 = vmatprep.mubr.f32.mxu0 %v2340_v38 }
  0x5e   : > { %1418 = vmatmul.mubr.f32.gmra.mrb[6].mxu1 %v2341_v48  ;;  %1550 = vmatmul.mubr.f32.gmra.mrb[6].mxu0 %v2341_v48 }
  0x5f   : > { %1675 = vmatpush3.bf16.msra.mxu1 %v1672_v10  ;;  %1771 = vmatpush3.bf16.msra.mxu0 %v2339_v30 }
  0x60   : > { %1677 = vmatprep.subr.bf16.mxu1 %v1676_v13  ;;  %1773 = vmatprep.subr.bf16.mxu0 %v2342_v63 }
  0x61   : > { %1452 = vmatprep.mubr.f32.mxu1 %v2343_v1  ;;  %1584 = vmatprep.mubr.f32.mxu0 %v1960_v26  ;;  %v2346_v26 = vld [vmem:[#allocation7_spill] sm:$0xff] }
  0x63   : > { %1679 = vmatpush3.bf16.msra.mxu1 %v1676_v13  ;;  %1775 = vmatpush3.bf16.msra.mxu0 %v2342_v63 }
  0x64   : > { %1681 = vmatprep.subr.bf16.mxu1 %v1680_v16  ;;  %1777 = vmatprep.subr.bf16.mxu0 %v2344_v2 }
  0x67   : > { %1683 = vmatpush3.bf16.msra.mxu1 %v1680_v16  ;;  %1779 = vmatpush3.bf16.msra.mxu0 %v2344_v2 }
  0x68   : > { %1685 = vmatprep.subr.bf16.mxu1 %v1684_v9  ;;  %1781 = vmatprep.subr.bf16.mxu0 %v2345_v60 }
  0x6b   : > { %1687 = vmatpush3.bf16.msra.mxu1 %v1684_v9  ;;  %1783 = vmatpush3.bf16.msra.mxu0 %v2345_v60 }
  0x6c   : > { %1689 = vmatprep.subr.bf16.mxu1 %v1688_v5  ;;  %1785 = vmatprep.subr.bf16.mxu0 %v2346_v26 }
  0x6f   : > { %1691 = vmatpush3.bf16.msra.mxu1 %v1688_v5  ;;  %1787 = vmatpush3.bf16.msra.mxu0 %v2346_v26 }
  0x72   : > { %1453 = vmatmul.mubr.f32.vlgmr.msra.gmra.mrb[0].mxu1 %v2036_v55  ;;  %1585 = vmatmul.mubr.f32.vlgmr.msra.gmra.mrb[0].mxu0 %v2000_v39 }
  0x73   : > { %1455 = vmatprep.mubr.f32.mxu1 %v2347_v7  ;;  %1587 = vmatprep.mubr.f32.mxu0 %v2038_v56 }
  0x76   : > { %1456 = vmatmul.mubr.f32.gmra.mrb[2].mxu1 %v2348_v31  ;;  %1588 = vmatmul.mubr.f32.gmra.mrb[2].mxu0 %v2042_v59 }
  0x77   : > { %1458 = vmatprep.mubr.f32.mxu1 %v2109_v45  ;;  %1590 = vmatprep.mubr.f32.mxu0 %v2082_v6 }
  0x7a   : > { %1459 = vmatmul.mubr.f32.gmra.mrb[4].mxu1 %v2131_v8  ;;  %1591 = vmatmul.mubr.f32.gmra.mrb[4].mxu0 %v2111_v49 }
  0x7b   : > { %1461 = vmatprep.mubr.f32.mxu1 %v2145_v12  ;;  %1593 = vmatprep.mubr.f32.mxu0 %v2340_v38 }
  0x7e   : > { %1462 = vmatmul.mubr.f32.gmra.mrb[6].mxu1 %v2151_v34  ;;  %1594 = vmatmul.mubr.f32.gmra.mrb[6].mxu0 %v2341_v48 }
 0x145   : > { %v1454_v39 = vpop.f32.mrb[0].mxu1  ;;  %v1586_v55 = vpop.f32.mrb[0].mxu0 }
 0x146   : > { %v1788_v56 = vadd.f32 %v1586_v55, %v1454_v39  ;;  %v625_v59 = vpop.f32.mrb[1].mxu1  ;;  %v1067_v6 = vpop.f32.mrb[1].mxu0 }
 0x147   : > { %v1789_v45 = vadd.f32 %v1067_v6, %v625_v59 }
 0x148   : > { %1114 = vst [vmem:[%s2282_s24 + $0x8] sm:$0xff] %v1788_v56 }
 0x149   : > { %1113 = vst [vmem:[%s2282_s24] sm:$0xff] %v1789_v45  ;;  %v1457_v34 = vpop.f32.mrb[2].mxu1  ;;  %v1589_v49 = vpop.f32.mrb[2].mxu0 }
 0x14a   : > { %v1790_v8 = vadd.f32 %v1589_v49, %v1457_v34  ;;  %v639_v12 = vpop.f32.mrb[3].mxu1  ;;  %v1079_v47 = vpop.f32.mrb[3].mxu0 }
 0x14b   : > { %v1791_v14 = vadd.f32 %v1079_v47, %v639_v12 }
 0x14c   : > { %1116 = vst [vmem:[%s2282_s24 + $0x18] sm:$0xff] %v1790_v8 }
 0x14d   : > { %1115 = vst [vmem:[%s2282_s24 + $0x10] sm:$0xff] %v1791_v14  ;;  %v1460_v50 = vpop.f32.mrb[4].mxu1  ;;  %v1592_v35 = vpop.f32.mrb[4].mxu0 }
 0x14e   : > { %v1792_v61 = vadd.f32 %v1592_v35, %v1460_v50  ;;  %v653_v36 = vpop.f32.mrb[5].mxu1  ;;  %v1091_v33 = vpop.f32.mrb[5].mxu0 }
 0x14f   : > { %v1793_v44 = vadd.f32 %v1091_v33, %v653_v36 }
 0x150   : > { %1118 = vst [vmem:[%s2282_s24 + $0x28] sm:$0xff] %v1792_v61 }
 0x151   : > { %1117 = vst [vmem:[%s2282_s24 + $0x20] sm:$0xff] %v1793_v44  ;;  %v1463_v28 = vpop.f32.mrb[6].mxu1  ;;  %v1595_v57 = vpop.f32.mrb[6].mxu0 }
 0x152   : > { %v1794_v22 = vadd.f32 %v1595_v57, %v1463_v28  ;;  %v667_v58 = vpop.f32.mrb[7].mxu1  ;;  %v1103_v23 = vpop.f32.mrb[7].mxu0 }
 0x153   : > { %v1795_v21 = vadd.f32 %v1103_v23, %v667_v58 }
 0x154   : > { %1120 = vst [vmem:[%s2282_s24 + $0x38] sm:$0xff] %v1794_v22 }
 0x155   : > { %1119 = vst [vmem:[%s2282_s24 + $0x30] sm:$0xff] %v1795_v21 }
 0x156 PF: > { %s12_s9 = sadd.s32 1, %s1842_s9  }
 0x157   : > { %p9_p4 = scmp.ge.s32.totalorder %s12_s9, 4  }
 0x159   :  { %11 = sbr.rel (!%p9_p4) target bundleno = 1 (0x1), region = 58 }

</bundles_post_ra>
